<compile_context>
chip_gen: v7x
topology: tpu7x:2x2x1
jax: 0.10.0
libtpu: 0.0.40
codegen_flags: <defaults>
</compile_context>

<pallas_src>
import jax
import jax.numpy as jnp
from jax.experimental import pallas as pl
from jax.experimental.pallas import tpu as pltpu

LANE = 128
_VMEM_LIMIT = 32 * 1024 * 1024  # safe on v5e/v6e/v7x


def _round_up(x, m):
    return (x + m - 1) // m * m


def _pick_m_tiling(m):
    """Return (tm, m_padded) with tm a multiple of 128 (bf16/f32 tiling friendly)."""
    if m > 512:
        return 512, _round_up(m, 512)
    mp = _round_up(m, 128)
    return mp, mp


def _pick_tk(k):
    for tk in (512, 256, 128):
        if k % tk == 0:
            return tk
    return k  # unreachable: K is always a multiple of 128 here


# ---------------------------------------------------------------------------
# In-kernel math helpers
# ---------------------------------------------------------------------------
def _fast_mish(y):
    # mish(y) = y * tanh(softplus(y)) = y * u / (u + 2), u = t*(t+2), t = exp(y).
    # 1 exp (EUP) + 1 approx reciprocal (EUP) instead of exp+log1p+tanh.
    t = jnp.exp(jnp.minimum(y, 20.0))
    u = t * (t + 2.0)
    m = y * u * pl.reciprocal(u + 2.0, approx=True)
    return jnp.where(y > 20.0, y, m)


# ---------------------------------------------------------------------------
# Pallas kernels
# ---------------------------------------------------------------------------
def _mm_bn_mish_kernel(x_ref, w_ref, s_ref, b_ref, o_ref, acc_ref):
    k = pl.program_id(1)

    @pl.when(k == 0)
    def _():
        acc_ref[...] = jnp.zeros_like(acc_ref)

    acc_ref[...] += jnp.dot(x_ref[...], w_ref[...],
                            preferred_element_type=jnp.float32)

    @pl.when(k == pl.num_programs(1) - 1)
    def _():
        y = acc_ref[...] * s_ref[...] + b_ref[...]
        o_ref[...] = _fast_mish(y).astype(o_ref.dtype)


def _mm_bn_mish_res_kernel(x_ref, w_ref, s_ref, b_ref, r_ref, o_ref, acc_ref):
    k = pl.program_id(1)

    @pl.when(k == 0)
    def _():
        acc_ref[...] = jnp.zeros_like(acc_ref)

    acc_ref[...] += jnp.dot(x_ref[...], w_ref[...],
                            preferred_element_type=jnp.float32)

    @pl.when(k == pl.num_programs(1) - 1)
    def _():
        y = acc_ref[...] * s_ref[...] + b_ref[...]
        out = r_ref[...].astype(jnp.float32) + _fast_mish(y)
        o_ref[...] = out.astype(o_ref.dtype)


def _concat_mm_bn_mish_kernel(x1_ref, x0_ref, w1_ref, w0_ref, s_ref, b_ref, o_ref):
    y = jnp.dot(x1_ref[...], w1_ref[...], preferred_element_type=jnp.float32)
    y += jnp.dot(x0_ref[...], w0_ref[...], preferred_element_type=jnp.float32)
    y = y * s_ref[...] + b_ref[...]
    o_ref[...] = _fast_mish(y).astype(o_ref.dtype)


# ---------------------------------------------------------------------------
# Pallas wrappers
# ---------------------------------------------------------------------------
def _pallas_conv_mm(x2d, w2d, scale, bias, residual=None, out_dtype=jnp.bfloat16):
    """out = mish(bn(x2d @ w2d)) [+ residual], tiled over M and the K reduction."""
    m, kdim = x2d.shape
    nc = w2d.shape[1]
    tm, mp = _pick_m_tiling(m)
    tk = _pick_tk(kdim)
    grid = (mp // tm, kdim // tk)

    x2d = x2d.astype(jnp.bfloat16)
    if mp != m:
        x2d = jnp.pad(x2d, ((0, mp - m), (0, 0)))
    w2d = w2d.astype(jnp.bfloat16)
    s2 = scale.reshape(1, nc).astype(jnp.float32)
    b2 = bias.reshape(1, nc).astype(jnp.float32)

    x_spec = pl.BlockSpec((tm, tk), lambda i, k: (i, k))
    w_spec = pl.BlockSpec((tk, nc), lambda i, k: (k, 0))
    v_spec = pl.BlockSpec((1, nc), lambda i, k: (0, 0))
    o_spec = pl.BlockSpec((tm, nc), lambda i, k: (i, 0))
    scratch = [pltpu.VMEM((tm, nc), jnp.float32)]
    cp = pltpu.CompilerParams(
        dimension_semantics=("parallel", "arbitrary"),
        vmem_limit_bytes=_VMEM_LIMIT,
    )
    out_shape = jax.ShapeDtypeStruct((mp, nc), out_dtype)

    if residual is None:
        out = pl.pallas_call(
            _mm_bn_mish_kernel,
            out_shape=out_shape,
            grid=grid,
            in_specs=[x_spec, w_spec, v_spec, v_spec],
            out_specs=o_spec,
            scratch_shapes=scratch,
            compiler_params=cp,
        )(x2d, w2d, s2, b2)
    else:
        r2d = residual.astype(out_dtype)
        if mp != m:
            r2d = jnp.pad(r2d, ((0, mp - m), (0, 0)))
        r_spec = pl.BlockSpec((tm, nc), lambda i, k: (i, 0))
        out = pl.pallas_call(
            _mm_bn_mish_res_kernel,
            out_shape=out_shape,
            grid=grid,
            in_specs=[x_spec, w_spec, v_spec, v_spec, r_spec],
            out_specs=o_spec,
            scratch_shapes=scratch,
            compiler_params=cp,
        )(x2d, w2d, s2, b2, r2d)

    return out[:m] if mp != m else out


def conv_bn_mish(x_nhwc, p, k, s, residual=None):
    """Conv(k,s,pad=k//2,bias=False)+BN+Mish on channel-padded NHWC activations."""
    w2d = p["w2d"]
    n, h, w, cin_p = x_nhwc.shape
    cout_p = w2d.shape[1]
    pad = k // 2

    if k == 1:
        xs = x_nhwc[:, ::s, ::s, :]
        ho, wo = xs.shape[1], xs.shape[2]
        x2d = xs.reshape(n * ho * wo, cin_p)
    else:
        xp = jnp.pad(x_nhwc, ((0, 0), (pad, pad), (pad, pad), (0, 0)))
        ho = (h + 2 * pad - k) // s + 1
        wo = (w + 2 * pad - k) // s + 1
        taps = [xp[:, dy:dy + s * (ho - 1) + 1:s, dx:dx + s * (wo - 1) + 1:s, :]
                for dy in range(k) for dx in range(k)]
        patches = jnp.stack(taps, axis=3).astype(jnp.bfloat16)  # (N,Ho,Wo,k*k,Cp)
        x2d = patches.reshape(n * ho * wo, k * k * cin_p)

    res2d = None if residual is None else residual.reshape(n * ho * wo, cout_p)
    out2d = _pallas_conv_mm(x2d, w2d, p["scale"], p["bias"], res2d)
    return out2d.reshape(n, ho, wo, cout_p)


def concat_conv_bn_mish(x1_nhwc, x0_nhwc, p):
    """concat([x1, x0], C) + 1x1 Conv+BN+Mish fused (no HBM concat tensor)."""
    n, h, w, c1p = x1_nhwc.shape
    c0p = x0_nhwc.shape[-1]
    cop = p["w1"].shape[1]
    m = n * h * w
    tm, mp = _pick_m_tiling(m)

    x1 = x1_nhwc.reshape(m, c1p).astype(jnp.bfloat16)
    x0 = x0_nhwc.reshape(m, c0p).astype(jnp.bfloat16)
    if mp != m:
        x1 = jnp.pad(x1, ((0, mp - m), (0, 0)))
        x0 = jnp.pad(x0, ((0, mp - m), (0, 0)))
    s2 = p["scale"].reshape(1, cop).astype(jnp.float32)
    b2 = p["bias"].reshape(1, cop).astype(jnp.float32)

    out = pl.pallas_call(
        _concat_mm_bn_mish_kernel,
        out_shape=jax.ShapeDtypeStruct((mp, cop), jnp.bfloat16),
        grid=(mp // tm,),
        in_specs=[
            pl.BlockSpec((tm, c1p), lambda i: (i, 0)),
            pl.BlockSpec((tm, c0p), lambda i: (i, 0)),
            pl.BlockSpec((c1p, cop), lambda i: (0, 0)),
            pl.BlockSpec((c0p, cop), lambda i: (0, 0)),
            pl.BlockSpec((1, cop), lambda i: (0, 0)),
            pl.BlockSpec((1, cop), lambda i: (0, 0)),
        ],
        out_specs=pl.BlockSpec((tm, cop), lambda i: (i, 0)),
        compiler_params=pltpu.CompilerParams(
            dimension_semantics=("parallel",),
            vmem_limit_bytes=_VMEM_LIMIT,
        ),
    )(x1, x0, p["w1"], p["w0"], s2, b2)

    out = out[:m] if mp != m else out
    return out.reshape(n, h, w, cop)


# ---------------------------------------------------------------------------
# Parameter construction (deterministic, synthetic), channel-padded to LANE
# ---------------------------------------------------------------------------
def _make_raw_conv(key, in_c, out_c, k, eps=1e-3):
    k1, k2, k3, k4, k5 = jax.random.split(key, 5)
    w = jax.random.normal(k1, (out_c, in_c, k, k), jnp.float32) * 0.1
    gamma = jax.random.uniform(k2, (out_c,), jnp.float32, 0.5, 1.5)
    beta = jax.random.normal(k3, (out_c,), jnp.float32) * 0.1
    mean = jax.random.normal(k4, (out_c,), jnp.float32) * 0.1
    var = jax.random.uniform(k5, (out_c,), jnp.float32, 0.5, 1.5)
    scale = gamma / jnp.sqrt(var + eps)
    bias = beta - mean * scale
    return w, scale, bias


def make_conv_params(key, in_c, out_c, k):
    w, scale, bias = _make_raw_conv(key, in_c, out_c, k)
    cin_p, cout_p = _round_up(in_c, LANE), _round_up(out_c, LANE)
    w4 = jnp.zeros((k, k, cin_p, cout_p), jnp.float32)
    w4 = w4.at[:, :, :in_c, :out_c].set(jnp.transpose(w, (2, 3, 1, 0)))
    return {
        "w2d": w4.reshape(k * k * cin_p, cout_p).astype(jnp.bfloat16),
        "scale": jnp.zeros((cout_p,), jnp.float32).at[:out_c].set(scale),
        "bias": jnp.zeros((cout_p,), jnp.float32).at[:out_c].set(bias),
        "out_c": out_c,
    }


def make_concat_conv_params(key, ch_x1, ch_x0, out_c):
    w, scale, bias = _make_raw_conv(key, ch_x1 + ch_x0, out_c, 1)
    w2 = w[:, :, 0, 0]                      # (out_c, ch_x1 + ch_x0), cat order [x1, x0]
    c1p = _round_up(ch_x1, LANE)
    c0p = _round_up(ch_x0, LANE)
    cop = _round_up(out_c, LANE)
    w1 = jnp.zeros((c1p, cop), jnp.float32).at[:ch_x1, :out_c].set(w2[:, :ch_x1].T)
    w0 = jnp.zeros((c0p, cop), jnp.float32).at[:ch_x0, :out_c].set(w2[:, ch_x1:].T)
    return {
        "w1": w1.astype(jnp.bfloat16),
        "w0": w0.astype(jnp.bfloat16),
        "scale": jnp.zeros((cop,), jnp.float32).at[:out_c].set(scale),
        "bias": jnp.zeros((cop,), jnp.float32).at[:out_c].set(bias),
        "out_c": out_c,
    }


def make_csp_params(key, in_c, out_c, n, first=False):
    keys = list(jax.random.split(key, 8 + 2 * max(n, 1)))
    it = iter(keys)
    p = {"first": first}
    p["down"] = make_conv_params(next(it), in_c, out_c, 3)
    if not first:
        ch = out_c // 2
        p["b0"] = make_conv_params(next(it), out_c, ch, 1)
        p["b1_cv0"] = make_conv_params(next(it), out_c, ch, 1)
        p["res"] = []
        for _ in range(n):
            p["res"].append({"cv1": make_conv_params(next(it), ch, ch, 1),   # e=1.0
                             "cv2": make_conv_params(next(it), ch, ch, 3)})
        p["b1_cv1"] = make_conv_params(next(it), ch, ch, 1)
        p["concat"] = make_concat_conv_params(next(it), ch, ch, out_c)
    else:
        ch = out_c
        p["b0"] = make_conv_params(next(it), out_c, ch, 1)
        p["b1_cv0"] = make_conv_params(next(it), out_c, ch, 1)
        c_mid = out_c // 2                                                    # e=0.5
        p["res"] = [{"cv1": make_conv_params(next(it), ch, c_mid, 1),
                     "cv2": make_conv_params(next(it), c_mid, ch, 3)}]
        p["b1_cv1"] = make_conv_params(next(it), ch, ch, 1)
        p["concat"] = make_concat_conv_params(next(it), ch, ch, out_c)
    return p


# ---------------------------------------------------------------------------
# CSPBlock forward
# ---------------------------------------------------------------------------
def csp_block_forward(x_nchw, params):
    n, c, _, _ = x_nchw.shape
    cin_p = _round_up(c, LANE)
    x = jnp.transpose(x_nchw, (0, 2, 3, 1))                       # NCHW -> NHWC
    if cin_p != c:
        x = jnp.pad(x, ((0, 0), (0, 0), (0, 0), (0, cin_p - c)))
    x = x.astype(jnp.bfloat16)

    x = conv_bn_mish(x, params["down"], k=3, s=2)                 # downsSample
    x0 = conv_bn_mish(x, params["b0"], k=1, s=1)                  # banch0_cv0
    x1 = conv_bn_mish(x, params["b1_cv0"], k=1, s=1)              # banch1_cv0
    for rp in params["res"]:                                      # ResBlocks
        y = conv_bn_mish(x1, rp["cv1"], k=1, s=1)
        x1 = conv_bn_mish(y, rp["cv2"], k=3, s=1, residual=x1)    # x + cv2(cv1(x))
    x1 = conv_bn_mish(x1, params["b1_cv1"], k=1, s=1)             # banch1_cv1
    out = concat_conv_bn_mish(x1, x0, params["concat"])           # cat + concat_conv fused

    out_c = params["concat"]["out_c"]
    out = out[..., :out_c].astype(jnp.float32)                    # drop channel padding
    return jnp.transpose(out, (0, 3, 1, 2))                       # NHWC -> NCHW


if __name__ == "__main__":
    key = jax.random.PRNGKey(0)
    kx, kp = jax.random.split(key)

    batch, in_c, out_c, spatial, n_blocks = 2, 4, 8, 16, 2
    x = jax.random.normal(kx, (batch, in_c, spatial, spatial), jnp.float32)
    params = make_csp_params(kp, in_c=in_c, out_c=out_c, n=n_blocks, first=False)

    out = csp_block_forward(x, params)
    out = jax.block_until_ready(out)

    assert out.shape == (batch, out_c, spatial // 2, spatial // 2), out.shape
    assert bool(jnp.all(jnp.isfinite(out)))
    print("KERNEL_OK")
</pallas_src>

<mosaic_0001>
module attributes {stable_mosaic.version = 11 : i64} {
  func.func @_mm_bn_mish_kernel(%arg0: i32, %arg1: i32, %arg2: memref<128x128xbf16, #tpu.memory_space<vmem>>, %arg3: memref<128x128xbf16, #tpu.memory_space<vmem>>, %arg4: memref<1x128xf32, #tpu.memory_space<vmem>>, %arg5: memref<1x128xf32, #tpu.memory_space<vmem>>, %arg6: memref<128x128xbf16, #tpu.memory_space<vmem>>, %arg7: memref<128x128xf32, #tpu.memory_space<vmem>>) attributes {dimension_semantics = [#tpu.dimension_semantics<parallel>, #tpu.dimension_semantics<arbitrary>], iteration_bounds = array<i64: 1, 9>, scalar_prefetch = 0 : i64, scratch_operands = 1 : i64, tpu.core_type = #tpu.core_type<tc>, window_params = [{transform_indices = @transform_0, window_bounds = array<i64: 128, 128>}, {transform_indices = @transform_1, window_bounds = array<i64: 128, 128>}, {pipeline_mode = #tpu.pipeline_mode<synchronous>, transform_indices = @transform_2, window_bounds = array<i64: 1, 128>}, {pipeline_mode = #tpu.pipeline_mode<synchronous>, transform_indices = @transform_3, window_bounds = array<i64: 1, 128>}, {transform_indices = @transform_4, window_bounds = array<i64: 128, 128>}]} {
    %c0_i32 = arith.constant 0 : i32
    %0 = arith.cmpi eq, %arg1, %c0_i32 : i32
    %1 = arith.extui %0 : i1 to i32
    %c0_i32_0 = arith.constant 0 : i32
    %2 = arith.cmpi ne, %1, %c0_i32_0 : i32
    scf.if %2 {
      %cst_9 = arith.constant 0.000000e+00 : f32
      %12 = vector.broadcast %cst_9 : f32 to vector<128x128xf32>
      %c0_10 = arith.constant 0 : index
      %c0_11 = arith.constant 0 : index
      %13 = vector.load %arg7[%c0_10, %c0_11] : memref<128x128xf32, #tpu.memory_space<vmem>>, vector<128x128xf32>
      tpu.vector_store %arg7[%c0_10, %c0_11], %12 {strides = array<i32>} : memref<128x128xf32, #tpu.memory_space<vmem>>, vector<128x128xf32>,
    } else {
    }
    %c0 = arith.constant 0 : index
    %c0_1 = arith.constant 0 : index
    %3 = vector.load %arg7[%c0, %c0_1] : memref<128x128xf32, #tpu.memory_space<vmem>>, vector<128x128xf32>
    %c0_2 = arith.constant 0 : index
    %c0_3 = arith.constant 0 : index
    %4 = vector.load %arg2[%c0_2, %c0_3] : memref<128x128xbf16, #tpu.memory_space<vmem>>, vector<128x128xbf16>
    %c0_4 = arith.constant 0 : index
    %c0_5 = arith.constant 0 : index
    %5 = vector.load %arg3[%c0_4, %c0_5] : memref<128x128xbf16, #tpu.memory_space<vmem>>, vector<128x128xbf16>
    %cst = arith.constant dense<0.000000e+00> : vector<128x128xf32>
    %6 = tpu.matmul %4, %5, %cst {dimension_numbers = #tpu.dot_dimension_numbers<[1], [0], [0], [1], [0, 0, 1, 1], [], []>} : vector<128x128xbf16>, vector<128x128xbf16>, vector<128x128xf32> -> vector<128x128xf32>
    %7 = arith.addf %3, %6 : vector<128x128xf32>
    %c0_6 = arith.constant 0 : index
    %c0_7 = arith.constant 0 : index
    %8 = vector.load %arg7[%c0_6, %c0_7] : memref<128x128xf32, #tpu.memory_space<vmem>>, vector<128x128xf32>
    tpu.vector_store %arg7[%c0_6, %c0_7], %7 {strides = array<i32>} : memref<128x128xf32, #tpu.memory_space<vmem>>, vector<128x128xf32>,
    %c8_i32 = arith.constant 8 : i32
    %9 = arith.cmpi eq, %arg1, %c8_i32 : i32
    %10 = arith.extui %9 : i1 to i32
    %c0_i32_8 = arith.constant 0 : i32
    %11 = arith.cmpi ne, %10, %c0_i32_8 : i32
    scf.if %11 {
      %c0_9 = arith.constant 0 : index
      %c0_10 = arith.constant 0 : index
      %12 = vector.load %arg7[%c0_9, %c0_10] : memref<128x128xf32, #tpu.memory_space<vmem>>, vector<128x128xf32>
      %c0_11 = arith.constant 0 : index
      %c0_12 = arith.constant 0 : index
      %13 = vector.load %arg4[%c0_11, %c0_12] : memref<1x128xf32, #tpu.memory_space<vmem>>, vector<1x128xf32>
      %14 = vector.broadcast %13 : vector<1x128xf32> to vector<128x128xf32>
      %15 = arith.mulf %12, %14 : vector<128x128xf32>
      %c0_13 = arith.constant 0 : index
      %c0_14 = arith.constant 0 : index
      %16 = vector.load %arg5[%c0_13, %c0_14] : memref<1x128xf32, #tpu.memory_space<vmem>>, vector<1x128xf32>
      %17 = vector.broadcast %16 : vector<1x128xf32> to vector<128x128xf32>
      %18 = arith.addf %15, %17 : vector<128x128xf32>
      %cst_15 = arith.constant 2.000000e+01 : f32
      %19 = vector.broadcast %cst_15 : f32 to vector<128x128xf32>
      %20 = arith.minimumf %18, %19 : vector<128x128xf32>
      %21 = math.exp %20 : vector<128x128xf32>
      %cst_16 = arith.constant 2.000000e+00 : f32
      %22 = vector.broadcast %cst_16 : f32 to vector<128x128xf32>
      %23 = arith.addf %21, %22 : vector<128x128xf32>
      %24 = arith.mulf %21, %23 : vector<128x128xf32>
      %25 = arith.mulf %18, %24 : vector<128x128xf32>
      %cst_17 = arith.constant 2.000000e+00 : f32
      %26 = vector.broadcast %cst_17 : f32 to vector<128x128xf32>
      %27 = arith.addf %24, %26 : vector<128x128xf32>
      %28 = tpu.reciprocal %27 {approx = true} : vector<128x128xf32> -> vector<128x128xf32>
      %29 = arith.mulf %25, %28 : vector<128x128xf32>
      %cst_18 = arith.constant 2.000000e+01 : f32
      %30 = vector.broadcast %cst_18 : f32 to vector<128x128xf32>
      %31 = arith.cmpf ogt, %18, %30 : vector<128x128xf32>
      %32 = arith.select %31, %18, %29 : vector<128x128xi1>, vector<128x128xf32>
      %33 = arith.truncf %32 : vector<128x128xf32> to vector<128x128xbf16>
      %c0_19 = arith.constant 0 : index
      %c0_20 = arith.constant 0 : index
      %34 = vector.load %arg6[%c0_19, %c0_20] : memref<128x128xbf16, #tpu.memory_space<vmem>>, vector<128x128xbf16>
      tpu.vector_store %arg6[%c0_19, %c0_20], %33 {strides = array<i32>} : memref<128x128xbf16, #tpu.memory_space<vmem>>, vector<128x128xbf16>,
    } else {
    }
    return
  }
  func.func @transform_0(%arg0: i32, %arg1: i32) -> (i32, i32) {
    %c0_i32 = arith.constant 0 : i32
    return %arg0, %arg1 : i32, i32
  }
  func.func @transform_1(%arg0: i32, %arg1: i32) -> (i32, i32) {
    %c0_i32 = arith.constant 0 : i32
    %c0_i32_0 = arith.constant 0 : i32
    return %arg1, %c0_i32 : i32, i32
  }
  func.func @transform_2(%arg0: i32, %arg1: i32) -> (i32, i32) {
    %c0_i32 = arith.constant 0 : i32
    %c0_i32_0 = arith.constant 0 : i32
    %c0_i32_1 = arith.constant 0 : i32
    return %c0_i32, %c0_i32_0 : i32, i32
  }
  func.func @transform_3(%arg0: i32, %arg1: i32) -> (i32, i32) {
    %c0_i32 = arith.constant 0 : i32
    %c0_i32_0 = arith.constant 0 : i32
    %c0_i32_1 = arith.constant 0 : i32
    return %c0_i32, %c0_i32_0 : i32, i32
  }
  func.func @transform_4(%arg0: i32, %arg1: i32) -> (i32, i32) {
    %c0_i32 = arith.constant 0 : i32
    %c0_i32_0 = arith.constant 0 : i32
    return %arg0, %c0_i32 : i32, i32
  }
}

</mosaic_0001>

<bundles_post_ra>
// kernel: tpu_custom_call.1
= control target key start
LH: loop header
LB: loop body
LE: loop exit
PB: predicated region body
PF: predicated region fallthrough
CT: control target
= control target key end

     0   :  { %9 = vsyncpa [#allocation4], 0  ;;  %s1879_s0 = inlined_call_operand.hbm [shape: bf16[128,1152], index: 0, kind: input, shape index: {}]   ;;  %s1880_s1 = inlined_call_operand.hbm [shape: bf16[1152,128], index: 1, kind: input, shape index: {}]   ;;  %s1881_s2 = inlined_call_operand.vmem [shape: f32[1,128], index: 2, kind: input, shape index: {}]   ;;  %s1882_s3 = inlined_call_operand.vmem [shape: f32[1,128], index: 3, kind: input, shape index: {}]   ;;  %s1883_s4 = inlined_call_operand.hbm [shape: bf16[128,128], index: 4, kind: output, shape index: {}]  }
   0x1   :  { %11 = vsyncpa [#allocation4 + $0x1], 0 }
   0x2   :  { %12 = vsyncpa [#allocation7], 0 }
   0x3   :  { %14 = vsyncpa [#allocation7 + $0x1], 0 }
   0x4   :  { %15 = vsyncpa [#allocation5], 0  ;;  %s1494_s15 = smov 0   ;;  %s1496_s16 = smov 0  }
   0x5   :  { %s1498_s17 = smov 0   ;;  %s1500_s18 = smov 0  }
   0x6   :  { %s1502_s19 = smov 0   ;;  %s1504_s20 = smov 0  }
   0x7 LB: > { %s982_s21 = sadd.s32 4294967295, %s1458_s20   ;;  %s30_s22 = sadd.s32 1, %s1454_s19  ;;  %s1458_s20 = sphi %s1504_s20, %s21_s20   ;;  %s1454_s19 = sphi %s1502_s19, %s1896_s19   ;;  %s1450_s18 = sphi %s1500_s18, %s1895_s18   ;;  %s1446_s17 = sphi %s1498_s17, %s1894_s17   ;;  %s1442_s16 = sphi %s1496_s16, %s1893_s16   ;;  %s1438_s15 = sphi %s1494_s15, %s1892_s15  }
   0x8   : > { %p31_p0 = scmp.ge.s32.totalorder %s30_s22, 9  ;;  %s42_s23 = sadd.s32 1, %s1446_s17 }
   0x9   : > { %p49_p1 = scmp.ne.s32.totalorder %s1446_s17, %s1442_s16  ;;  %p50_p2 = scmp.eq.s32.totalorder %s1458_s20, 0 }
   0xa   : > { %s1898_s22 = smov (%p31_p0, %s30_s22), 0  ;;  %p55_p4 = scmp.ne.s32.totalorder %s1442_s16, %s1438_s15 }
   0xb   : > { %p1530_p3 = por %p50_p2, %p49_p1  ;;  %s38_s25 = ssub.s32 %s1454_s19, %s1898_s22 }
   0xc   : > { %p56_p5 = scmp.eq.s32.totalorder %s982_s21, 0  ;;  %p40_p6 = scmp.eq.s32.totalorder %s38_s25, 0 }
   0xd   : > { %p1176_p8 = scmp.lt.s32.totalorder %s1458_s20, 9  ;;  %s1548_s28 = sand.u32 1, %s1446_s17  }
   0xe   : > { %p1539_p7 = por %p56_p5, %p55_p4  ;;  %s986_s29 = sshll.u32 %s1454_s19, 6 }
   0xf   : > { %s1545_s27 = scalar_select %p40_p6, %s1446_s17, %s42_s23  }
  0x10   : > { %s1886_s26 = scalar_select %p1539_p7, 1, 0 }
  0x11   : > { %s985_s30 = sshll.u32 %s1548_s28, 6  ;;  %s1555_s7 = scalar_lea.hbm %s1879_s0, %s986_s29 }
  0x12   : > { %s183_s8 = scalar_lea.vmem [#allocation3], %s985_s30  ;;  %p1561_p9 = pnand %p1176_p8, %p1530_p3 }
  0x13   : > { %s192_s9 = sshll.u32 %s183_s8, 4  ;;  %s180_s11 = scalar_lea.sflag [#allocation4], %s1548_s28  ;;  %s1565_s9 = int_to_ptr.vmem [resolvable:$true] %s192_s9 }
  0x14   : > { %s1314_s12 = scalar_lea.hbm %s1555_s7, 1024  ;;  %p1316_p12 = pneg %p1561_p9 }
  0x15   : > { %p1315_p11 = scmp.ne.s32.totalorder %s1555_s7, %s1314_s12  ;;  %s1319_s15 = scalar_lea.hbm %s1879_s0, 9216 }
  0x16   : > { %p1320_p1 = scmp.lt.u32.totalorder %s1555_s7, %s1879_s0  ;;  %p1321_p2 = scmp.lt.u32.totalorder %s1319_s15, %s1314_s12 }
  0x17   : > { %p1317_p13 = pnand %p1316_p12, %p1315_p11  ;;  %p1323_p4 = scmp.lt.u32.totalorder %s1314_s12, %s1555_s7 }
  0x18   : > { %p1322_p3 = por %p1321_p2, %p1320_p1 }
  0x19   : > { %p1318_p0 = pneg %p1317_p13 }
  0x1a   : > { %p1324_p5 = por %p1323_p4, %p1322_p3 }
  0x1c   : > { %p1325_p6 = pnand %p1324_p5, %p1318_p0 }
  0x1e   : > { %1328 = shalt.err (!%p1325_p6)
}
  0x1f   : > { %s1329_s25 = scalar_lea.vmem %s1565_s9, 1024  ;;  %s1460_s29 = smov [#allocation3]  }
  0x20   : > { %p1330_p8 = scmp.ne.s32.totalorder %s1565_s9, %s1329_s25  ;;  %s1334_s5 = sshll.u32 %s1460_s29, 4  ;;  %s1335_s5 = int_to_ptr.vmem [resolvable:$false] %s1334_s5 }
  0x21   : > { %s1336_s6 = scalar_lea.vmem %s1335_s5, 2048  ;;  %p1337_p10 = scmp.lt.s32.totalorder %s1565_s9, %s1335_s5 }
  0x22   : > { %p1332_p11 = pnand %p1330_p8, %p1316_p12  ;;  %p1338_p1 = scmp.lt.s32.totalorder %s1336_s6, %s1329_s25 }
  0x24   : > { %p1333_p13 = pneg %p1332_p11  ;;  %p1339_p2 = por %p1338_p1, %p1337_p10 }
  0x26   : > { %p1340_p3 = pnand %p1339_p2, %p1333_p13 }
  0x28   : > { %1343 = shalt.err (!%p1340_p3)
}
  0x29   : > { %s1461_s8 = smov 576   ;;  %s1462_s12 = smov 64  }
  0x2a   : > { %s1463_s13 = smov 4   ;;  %p221_p10 = scmp.lt.s32.totalorder %s1458_s20, 10 }
  0x2b   : > { %1172 = dma.hbm_to_vmem [thread:$0]  (!%p1561_p9), %s1555_s7, 1024, %s1565_s9, %s180_s11, %s1461_s8, %s1462_s12, %s1463_s13  }
  0x2c   : > { %s1033_s14 = sshll.u32 %s1454_s19, 10  ;;  %p1888_p0 = scmp.ge.s32.totalorder %s1458_s20, 1 }
  0x2d   : > { %s1609_s25 = scalar_lea.hbm %s1880_s1, %s1033_s14  ;;  %s206_s29 = scalar_lea.vmem [#allocation6], %s985_s30 }
  0x2e   : > { %p1602_p4 = pnand %p1888_p0, %p221_p10  ;;  %s213_s5 = sshll.u32 %s206_s29, 4  ;;  %s1613_s5 = int_to_ptr.vmem [resolvable:$true] %s213_s5 }
  0x2f   : > { %s203_s7 = scalar_lea.sflag [#allocation7], %s1548_s28  ;;  %s1344_s9 = scalar_lea.hbm %s1609_s25, 1024 }
  0x30   : > { %p1345_p5 = scmp.ne.s32.totalorder %s1609_s25, %s1344_s9  ;;  %s1349_s8 = scalar_lea.hbm %s1880_s1, 9216 }
  0x31   : > { %p1350_p11 = scmp.lt.u32.totalorder %s1609_s25, %s1880_s1  ;;  %p1351_p13 = scmp.lt.u32.totalorder %s1349_s8, %s1344_s9 }
  0x32   : > { %p1347_p6 = pnand %p1345_p5, %p1316_p12  ;;  %p1353_p2 = scmp.lt.u32.totalorder %s1344_s9, %s1609_s25 }
  0x33   : > { %p1352_p1 = por %p1351_p13, %p1350_p11 }
  0x34   : > { %p1348_p8 = pneg %p1347_p6 }
  0x35   : > { %p1354_p3 = por %p1353_p2, %p1352_p1 }
  0x37   : > { %p1355_p10 = pnand %p1354_p3, %p1348_p8 }
  0x39   : > { %1358 = shalt.err (!%p1355_p10)
}
  0x3a   : > { %s1359_s30 = scalar_lea.vmem %s1613_s5, 1024  ;;  %s1464_s24 = smov [#allocation6]  }
  0x3b   : > { %p1360_p0 = scmp.ne.s32.totalorder %s1613_s5, %s1359_s30  ;;  %s1364_s29 = sshll.u32 %s1464_s24, 4  ;;  %s1365_s29 = int_to_ptr.vmem [resolvable:$false] %s1364_s29 }
  0x3c   : > { %s1366_s11 = scalar_lea.vmem %s1365_s29, 2048  ;;  %p1367_p7 = scmp.lt.s32.totalorder %s1613_s5, %s1365_s29 }
  0x3d   : > { %p1362_p5 = pnand %p1360_p0, %p1316_p12  ;;  %p1368_p11 = scmp.lt.s32.totalorder %s1366_s11, %s1359_s30 }
  0x3f   : > { %p1363_p6 = pneg %p1362_p5  ;;  %p1369_p13 = por %p1368_p11, %p1367_p7 }
  0x41   : > { %p1370_p1 = pnand %p1369_p13, %p1363_p6 }
  0x43   : > { %1373 = shalt.err (!%p1370_p1)
}
  0x44   : > { %1175 = dma.hbm_to_vmem [thread:$0]  (!%p1561_p9), %s1609_s25, 1024, %s1613_s5, %s203_s7, %s1462_s12, %s1462_s12, %s1463_s13  }
  0x45   : > { %225 = sbr.rel (%p1602_p4) target bundleno = 449 (0x1c1), region = 36  ;;  %s227_s9 = sand.u32 (!%p1602_p4), 1, %s1442_s16  }
  0x46   : > { %s991_s6 = sshll.u32 (!%p1602_p4), %s227_s9, 6  ;;  %s228_s8 = scalar_lea.sflag (!%p1602_p4), [#allocation4], %s227_s9 }
  0x47   : > { %s1647_s14 = scalar_lea.vmem (!%p1602_p4), [#allocation3], %s991_s6  ;;  %p1890_p7 = scmp.ne.s32.totalorder (!%p1602_p4), %s1886_s26, 0 }
  0x4c   : > { %1425 = dma.done.wait (%p1890_p7), %s228_s8, 1024  }
  0x4d   : > { %1427 = vsyncadd (%p1890_p7), %s228_s8, 4294966272  ;;  %s237_s28 = scalar_lea.sflag [#allocation7], %s227_s9  ;;  %s1653_s10 = scalar_lea.vmem [#allocation6], %s991_s6 }
  0x4e   : > { %1429 = dma.done.wait (%p1890_p7), %s237_s28, 1024  }
  0x4f   : > { %1431 = vsyncadd (%p1890_p7), %s237_s28, 4294966272  ;;  %p993_p9 = scmp.ne.s32.totalorder %s1450_s18, 0 }
  0x50   : > { %v1465_v0 = vmov (!%p993_p9), 0.0  }
  0x51   : > { %272 = sbr.rel (%p993_p9) target bundleno = 89 (0x59), region = 48  ;;  %273 = vst [vmem:[#allocation2] sm:$0xff] (!%p993_p9), %v1465_v0  ;;  %274 = vst [vmem:[#allocation2 + $0x8] sm:$0xff] (!%p993_p9), %v1465_v0 }
  0x52   : > { %275 = vst [vmem:[#allocation2 + $0x10] sm:$0xff] (!%p993_p9), %v1465_v0  ;;  %276 = vst [vmem:[#allocation2 + $0x18] sm:$0xff] (!%p993_p9), %v1465_v0 }
  0x53   : > { %277 = vst [vmem:[#allocation2 + $0x20] sm:$0xff] (!%p993_p9), %v1465_v0  ;;  %278 = vst [vmem:[#allocation2 + $0x28] sm:$0xff] (!%p993_p9), %v1465_v0 }
  0x54   : > { %279 = vst [vmem:[#allocation2 + $0x30] sm:$0xff] (!%p993_p9), %v1465_v0  ;;  %280 = vst [vmem:[#allocation2 + $0x38] sm:$0xff] (!%p993_p9), %v1465_v0 }
  0x55   : > { %281 = vst [vmem:[#allocation2 + $0x40] sm:$0xff] (!%p993_p9), %v1465_v0  ;;  %282 = vst [vmem:[#allocation2 + $0x48] sm:$0xff] (!%p993_p9), %v1465_v0 }
  0x56   : > { %283 = vst [vmem:[#allocation2 + $0x50] sm:$0xff] (!%p993_p9), %v1465_v0  ;;  %284 = vst [vmem:[#allocation2 + $0x58] sm:$0xff] (!%p993_p9), %v1465_v0 }
  0x57   : > { %285 = vst [vmem:[#allocation2 + $0x60] sm:$0xff] (!%p993_p9), %v1465_v0  ;;  %286 = vst [vmem:[#allocation2 + $0x68] sm:$0xff] (!%p993_p9), %v1465_v0 }
  0x58   : > { %287 = vst [vmem:[#allocation2 + $0x70] sm:$0xff] %v1465_v0  ;;  %288 = vst [vmem:[#allocation2 + $0x78] sm:$0xff] %v1465_v0 }
  0x59 PF: > { %v1234_v1 = vld [vmem:[%s1653_s10] sm:$0xff]   ;;  %v1235_v2 = vld [vmem:[%s1653_s10 + $0x8] sm:$0xff]   ;;  %v1236_v3 = vld [vmem:[%s1653_s10 + $0x10] sm:$0xff]   ;;  %p1010_p12 = scmp.ne.s32.totalorder %s1450_s18, 8 }
  0x5a   : > { %1113 = vmatprep.subr.bf16.mxu0 %v1234_v1  ;;  %1145 = vmatprep.subr.bf16.mxu1 %v1234_v1  ;;  %v1237_v4 = vld [vmem:[%s1653_s10 + $0x18] sm:$0xff]   ;;  %v1242_v5 = vld [vmem:[%s1647_s14] sm:$0xff]   ;;  %v1239_v8 = vld [vmem:[%s1653_s10 + $0x28] sm:$0xff]  }
  0x5b   : > { %1114 = vmatpush3.bf16.msra.mxu0 %v1234_v1  ;;  %1153 = vmatpush3.bf16.msra.mxu1 %v1234_v1  ;;  %v1243_v6 = vld [vmem:[%s1647_s14 + $0x20] sm:$0xff]   ;;  %v1240_v9 = vld [vmem:[%s1653_s10 + $0x30] sm:$0xff]   ;;  %v1241_v10 = vld [vmem:[%s1653_s10 + $0x38] sm:$0xff]  }
  0x5c   : > { %1115 = vmatprep.subr.bf16.mxu0 %v1235_v2  ;;  %1146 = vmatprep.subr.bf16.mxu1 %v1235_v2  ;;  %v1238_v7 = vld [vmem:[%s1653_s10 + $0x20] sm:$0xff]   ;;  %v1244_v11 = vld [vmem:[%s1647_s14 + $0x8] sm:$0xff]   ;;  %v1246_v13 = vld [vmem:[%s1647_s14 + $0x10] sm:$0xff]  }
  0x5d   : > { %1129 = vmatprep.mubr.bf16.mxu0 %v1242_v5  ;;  %1137 = vmatprep.mubr.bf16.mxu1 %v1243_v6  ;;  %v1245_v12 = vld [vmem:[%s1647_s14 + $0x28] sm:$0xff]   ;;  %v1247_v14 = vld [vmem:[%s1647_s14 + $0x30] sm:$0xff]   ;;  %v1248_v15 = vld [vmem:[%s1647_s14 + $0x18] sm:$0xff]  }
  0x5e   : > { %v1249_v16 = vld [vmem:[%s1647_s14 + $0x38] sm:$0xff]   ;;  %v291_v17 = vld [vmem:[#allocation2 + $0x10] sm:$0xff]  ;;  %v289_v19 = vld [vmem:[#allocation2] sm:$0xff] }
  0x5f   : > { %1116 = vmatpush3.bf16.msra.mxu0 %v1235_v2  ;;  %1154 = vmatpush3.bf16.msra.mxu1 %v1235_v2  ;;  %v299_v18 = vld [vmem:[#allocation2 + $0x50] sm:$0xff]  ;;  %v297_v20 = vld [vmem:[#allocation2 + $0x40] sm:$0xff]  ;;  %v292_v23 = vld [vmem:[#allocation2 + $0x18] sm:$0xff] }
  0x60   : > { %1117 = vmatprep.subr.bf16.mxu0 %v1236_v3  ;;  %1147 = vmatprep.subr.bf16.mxu1 %v1236_v3  ;;  %v300_v24 = vld [vmem:[#allocation2 + $0x58] sm:$0xff]  ;;  %v290_v29 = vld [vmem:[#allocation2 + $0x8] sm:$0xff]  ;;  %v295_v41 = vld [vmem:[#allocation2 + $0x30] sm:$0xff] }
  0x61   : > { %v298_v30 = vld [vmem:[#allocation2 + $0x48] sm:$0xff]  ;;  %v303_v42 = vld [vmem:[#allocation2 + $0x70] sm:$0xff]  ;;  %v293_v43 = vld [vmem:[#allocation2 + $0x20] sm:$0xff] }
  0x62   : > { %v301_v44 = vld [vmem:[#allocation2 + $0x60] sm:$0xff]  ;;  %v296_v47 = vld [vmem:[#allocation2 + $0x38] sm:$0xff]  ;;  %v294_v53 = vld [vmem:[#allocation2 + $0x28] sm:$0xff] }
  0x63   : > { %1118 = vmatpush3.bf16.msra.mxu0 %v1236_v3  ;;  %1155 = vmatpush3.bf16.msra.mxu1 %v1236_v3  ;;  %v304_v48 = vld [vmem:[#allocation2 + $0x78] sm:$0xff]  ;;  %v302_v54 = vld [vmem:[#allocation2 + $0x68] sm:$0xff]  ;;  %v1680_v3 = vld [vmem:[%s1881_s2] ss:$0 sm:$0xff] (!%p1010_p12) }
  0x64   : > { %1119 = vmatprep.subr.bf16.mxu0 %v1237_v4  ;;  %1148 = vmatprep.subr.bf16.mxu1 %v1237_v4  ;;  %v1687_v6 = vld [vmem:[%s1882_s3] ss:$0 sm:$0xff] (!%p1010_p12) }
  0x67   : > { %1120 = vmatpush3.bf16.msra.mxu0 %v1237_v4  ;;  %1156 = vmatpush3.bf16.msra.mxu1 %v1237_v4 }
  0x68   : > { %1121 = vmatprep.subr.bf16.mxu0 %v1238_v7  ;;  %1149 = vmatprep.subr.bf16.mxu1 %v1238_v7 }
  0x6b   : > { %1122 = vmatpush3.bf16.msra.mxu0 %v1238_v7  ;;  %1157 = vmatpush3.bf16.msra.mxu1 %v1238_v7 }
  0x6c   : > { %1123 = vmatprep.subr.bf16.mxu0 %v1239_v8  ;;  %1150 = vmatprep.subr.bf16.mxu1 %v1239_v8 }
  0x6f   : > { %1124 = vmatpush3.bf16.msra.mxu0 %v1239_v8  ;;  %1158 = vmatpush3.bf16.msra.mxu1 %v1239_v8 }
  0x70   : > { %1125 = vmatprep.subr.bf16.mxu0 %v1240_v9  ;;  %1151 = vmatprep.subr.bf16.mxu1 %v1240_v9 }
  0x73   : > { %1126 = vmatpush3.bf16.msra.mxu0 %v1240_v9  ;;  %1159 = vmatpush3.bf16.msra.mxu1 %v1240_v9 }
  0x74   : > { %1127 = vmatprep.subr.bf16.mxu0 %v1241_v10  ;;  %1152 = vmatprep.subr.bf16.mxu1 %v1241_v10 }
  0x77   : > { %1128 = vmatpush3.bf16.msra.mxu0 %v1241_v10  ;;  %1160 = vmatpush3.bf16.msra.mxu1 %v1241_v10 }
  0x7a   : > { %1130 = vmatmul.mubr.bf16.vlgmr.msra.gmra.mrb[0].mxu0 %v1244_v11  ;;  %1138 = vmatmul.mubr.bf16.vlgmr.msra.gmra.mrb[0].mxu1 %v1245_v12 }
  0x7b   : > { %1133 = vmatprep.mubr.bf16.mxu0 %v1246_v13  ;;  %1141 = vmatprep.mubr.bf16.mxu1 %v1247_v14 }
  0x82   : > { %1134 = vmatmul.mubr.bf16.gmra.mrb[4].mxu0 %v1248_v15  ;;  %1142 = vmatmul.mubr.bf16.gmra.mrb[4].mxu1 %v1249_v16 }
 0x14d   : > { %v1131_v21 = vpop.f32.mrb[0].mxu0  ;;  %v1139_v22 = vpop.f32.mrb[0].mxu1 }
 0x14e   : > { %v532_v25 = vadd.f32 %v1131_v21, %v291_v17  ;;  %v540_v26 = vadd.f32 %v1139_v22, %v299_v18  ;;  %v467_v27 = vpop.f32.mrb[1].mxu0  ;;  %v499_v28 = vpop.f32.mrb[1].mxu1 }
 0x14f   : > { %v530_v31 = vadd.f32 %v467_v27, %v289_v19  ;;  %v538_v32 = vadd.f32 %v499_v28, %v297_v20  ;;  %v1132_v33 = vpop.f32.mrb[2].mxu0  ;;  %v1140_v34 = vpop.f32.mrb[2].mxu1 }
 0x150   : > { %548 = vst [vmem:[#allocation2 + $0x10] sm:$0xff] %v532_v25  ;;  %556 = vst [vmem:[#allocation2 + $0x50] sm:$0xff] %v540_v26  ;;  %v533_v35 = vadd.f32 %v1132_v33, %v292_v23  ;;  %v541_v36 = vadd.f32 %v1140_v34, %v300_v24  ;;  %v470_v37 = vpop.f32.mrb[3].mxu0  ;;  %v502_v38 = vpop.f32.mrb[3].mxu1 }
 0x151   : > { %546 = vst [vmem:[#allocation2] sm:$0xff] %v530_v31  ;;  %554 = vst [vmem:[#allocation2 + $0x40] sm:$0xff] %v538_v32  ;;  %v531_v39 = vadd.f32 %v470_v37, %v290_v29  ;;  %v539_v40 = vadd.f32 %v502_v38, %v298_v30 }
 0x152   : > { %549 = vst [vmem:[#allocation2 + $0x18] sm:$0xff] %v533_v35  ;;  %557 = vst [vmem:[#allocation2 + $0x58] sm:$0xff] %v541_v36 }
 0x153   : > { %547 = vst [vmem:[#allocation2 + $0x8] sm:$0xff] %v531_v39  ;;  %555 = vst [vmem:[#allocation2 + $0x48] sm:$0xff] %v539_v40 }
 0x155   : > { %v1135_v45 = vpop.f32.mrb[4].mxu0  ;;  %v1143_v46 = vpop.f32.mrb[4].mxu1  ;;  %565 = sbr.rel (%p1010_p12) target bundleno = 423 (0x1a7), region = 52 }
 0x156   : > { %v536_v49 = vadd.f32 %v1135_v45, %v295_v41  ;;  %v544_v50 = vadd.f32 %v1143_v46, %v303_v42  ;;  %v483_v51 = vpop.f32.mrb[5].mxu0  ;;  %v515_v52 = vpop.f32.mrb[5].mxu1 }
 0x157   : > { %v534_v55 = vadd.f32 %v483_v51, %v293_v43  ;;  %v542_v56 = vadd.f32 %v515_v52, %v301_v44  ;;  %v1136_v57 = vpop.f32.mrb[6].mxu0  ;;  %v1144_v58 = vpop.f32.mrb[6].mxu1  ;;  %v568_v7 = vld [vmem:[#allocation2 + $0x10] sm:$0xff] (!%p1010_p12) }
 0x158   : > { %552 = vst [vmem:[#allocation2 + $0x30] sm:$0xff] %v536_v49  ;;  %560 = vst [vmem:[#allocation2 + $0x70] sm:$0xff] %v544_v50  ;;  %v537_v59 = vadd.f32 %v1136_v57, %v296_v47  ;;  %v545_v60 = vadd.f32 %v1144_v58, %v304_v48  ;;  %v486_v61 = vpop.f32.mrb[7].mxu0  ;;  %v518_v62 = vpop.f32.mrb[7].mxu1  ;;  %v566_v1 = vld [vmem:[#allocation2] sm:$0xff] (!%p1010_p12)  ;;  %v591_v9 = vmul.f32 (!%p1010_p12), %v1680_v3, %v568_v7  ;;  %v576_v41 = vld [vmem:[#allocation2 + $0x50] sm:$0xff] (!%p1010_p12) }
 0x159   : > { %550 = vst [vmem:[#allocation2 + $0x20] sm:$0xff] %v534_v55  ;;  %558 = vst [vmem:[#allocation2 + $0x60] sm:$0xff] %v542_v56  ;;  %v535_v63 = vadd.f32 %v486_v61, %v294_v53  ;;  %v543_v0 = vadd.f32 %v518_v62, %v302_v54  ;;  %v589_v4 = vmul.f32 (!%p1010_p12), %v1680_v3, %v566_v1  ;;  %v569_v8 = vld [vmem:[#allocation2 + $0x18] sm:$0xff] (!%p1010_p12)  ;;  %v574_v39 = vld [vmem:[#allocation2 + $0x40] sm:$0xff] (!%p1010_p12) }
 0x15a   : > { %553 = vst [vmem:[#allocation2 + $0x38] sm:$0xff] %v537_v59  ;;  %561 = vst [vmem:[#allocation2 + $0x78] sm:$0xff] %v545_v60  ;;  %v567_v2 = vld [vmem:[#allocation2 + $0x8] sm:$0xff] (!%p1010_p12)  ;;  %v592_v10 = vmul.f32 (!%p1010_p12), %v1680_v3, %v569_v8  ;;  %v1700_v19 = vadd.f32 (!%p1010_p12), %v1687_v6, %v591_v9  ;;  %v597_v46 = vmul.f32 (!%p1010_p12), %v1680_v3, %v574_v39  ;;  %v577_v48 = vld [vmem:[#allocation2 + $0x58] sm:$0xff] (!%p1010_p12) }
 0x15b   : > { %551 = vst [vmem:[#allocation2 + $0x28] sm:$0xff] %v535_v63  ;;  %559 = vst [vmem:[#allocation2 + $0x68] sm:$0xff] %v543_v0  ;;  %v590_v5 = vmul.f32 (!%p1010_p12), %v1680_v3, %v567_v2  ;;  %v1692_v14 = vadd.f32 (!%p1010_p12), %v1687_v6, %v589_v4  ;;  %v575_v40 = vld [vmem:[#allocation2 + $0x48] sm:$0xff] (!%p1010_p12)  ;;  %v599_v49 = vmul.f32 (!%p1010_p12), %v1680_v3, %v576_v41 }
 0x15c   : > { %v1703_v20 = vadd.f32 %v1687_v6, %v592_v10  ;;  %v630_v25 = vmin.f32 %v1700_v19, 20.0  ;;  %v598_v47 = vmul.f32 %v1680_v3, %v575_v40  ;;  %v1731_v51 = vadd.f32 %v1687_v6, %v597_v46 }
 0x15d   : > { %v1695_v15 = vadd.f32 %v1687_v6, %v590_v5  ;;  %v628_v23 = vmin.f32 %v1692_v14, 20.0  ;;  %v1737_v53 = vadd.f32 %v1687_v6, %v599_v49  ;;  %v600_v55 = vmul.f32 %v1680_v3, %v577_v48 }
 0x15e   : > { %v631_v26 = vmin.f32 %v1703_v20, 20.0  ;;  %v648_v31 = vmul.f32 1.442695, %v630_v25  ;;  %v1734_v52 = vadd.f32 %v1687_v6, %v598_v47  ;;  %v636_v56 = vmin.f32 %v1731_v51, 20.0 }
 0x15f   : > { %v572_v13 = vld [vmem:[#allocation2 + $0x30] sm:$0xff]  ;;  %v629_v24 = vmin.f32 %v1695_v15, 20.0  ;;  %v644_v27 = vmul.f32 1.442695, %v628_v23  ;;  %v638_v59 = vmin.f32 %v1737_v53, 20.0  ;;  %v1746_v2 = vadd.f32 %v1687_v6, %v600_v55 }
 0x160   : > { %v570_v11 = vld [vmem:[#allocation2 + $0x20] sm:$0xff]  ;;  %v595_v21 = vmul.f32 %v1680_v3, %v572_v13  ;;  %v650_v32 = vmul.f32 1.442695, %v631_v26  ;;  %v637_v57 = vmin.f32 %v1734_v52, 20.0  ;;  %v660_v62 = vmul.f32 1.442695, %v636_v56 }
 0x161   : > { %v593_v16 = vmul.f32 %v1680_v3, %v570_v11  ;;  %v573_v18 = vld [vmem:[#allocation2 + $0x38] sm:$0xff]  ;;  %v646_v28 = vmul.f32 1.442695, %v629_v24  ;;  %1250 = vpow2.f32 %v644_v27  ;;  %v578_v50 = vld [vmem:[#allocation2 + $0x60] sm:$0xff]  ;;  %v664_v4 = vmul.f32 1.442695, %v638_v59 }
 0x162   : > { %v571_v12 = vld [vmem:[#allocation2 + $0x28] sm:$0xff]  ;;  %v596_v22 = vmul.f32 %v1680_v3, %v573_v18  ;;  %v1718_v33 = vadd.f32 %v1687_v6, %v595_v21  ;;  %v601_v58 = vmul.f32 %v1680_v3, %v578_v50  ;;  %v662_v63 = vmul.f32 1.442695, %v637_v57  ;;  %v580_v25 = vld [vmem:[#allocation2 + $0x70] sm:$0xff]  ;;  %v581_v41 = vld [vmem:[#allocation2 + $0x78] sm:$0xff] }
 0x163   : > { %v594_v17 = vmul.f32 %v1680_v3, %v571_v12  ;;  %v1712_v29 = vadd.f32 %v1687_v6, %v593_v16  ;;  %1252 = vpow2.f32 %v646_v28  ;;  %v579_v54 = vld [vmem:[#allocation2 + $0x68] sm:$0xff]  ;;  %v639_v24 = vmin.f32 %v1746_v2, 20.0 }
 0x164   : > { %v1721_v34 = vadd.f32 %v1687_v6, %v596_v22  ;;  %v634_v37 = vmin.f32 %v1718_v33, 20.0  ;;  %1254 = vpow2.f32 %v648_v31  ;;  %v602_v60 = vmul.f32 %v1680_v3, %v579_v54 }
 0x165   : > { %v1715_v30 = vadd.f32 %v1687_v6, %v594_v17  ;;  %v632_v35 = vmin.f32 %v1712_v29, 20.0  ;;  %1256 = vpow2.f32 %v650_v32  ;;  %v1749_v8 = vadd.f32 %v1687_v6, %v601_v58 }
 0x166   : > { %v635_v38 = vmin.f32 %v1721_v34, 20.0  ;;  %v656_v44 = vmul.f32 1.442695, %v634_v37  ;;  %v1752_v12 = vadd.f32 %v1687_v6, %v602_v60  ;;  %vm772_vm0 = vcmp.gt.f32.partialorder %v1692_v14, 20.0 }
 0x167   : > { %v633_v36 = vmin.f32 %v1715_v30, 20.0  ;;  %v652_v42 = vmul.f32 1.442695, %v632_v35  ;;  %v640_v32 = vmin.f32 %v1749_v8, 20.0  ;;  %vm773_vm1 = vcmp.gt.f32.partialorder %v1695_v15, 20.0 }
 0x168   : > { %v658_v45 = vmul.f32 1.442695, %v635_v38  ;;  %v641_v38 = vmin.f32 %v1752_v12, 20.0  ;;  %vm774_vm2 = vcmp.gt.f32.partialorder %v1700_v19, 20.0  ;;  %v604_v50 = vmul.f32 %v1680_v3, %v581_v41 }
 0x169   : > { %v654_v43 = vmul.f32 1.442695, %v633_v36  ;;  %1258 = vpow2.f32 %v652_v42  ;;  %v603_v42 = vmul.f32 %v1680_v3, %v580_v25  ;;  %v668_v48 = vmul.f32 1.442695, %v640_v32 }
 0x16a   : > { %vm775_vm3 = vcmp.gt.f32.partialorder %v1703_v20, 20.0  ;;  %v670_v56 = vmul.f32 1.442695, %v641_v38  ;;  %vm776_vm4 = vcmp.gt.f32.partialorder %v1712_v29, 20.0  ;;  %vm777_vm5 = vcmp.gt.f32.partialorder %v1715_v30, 20.0 }
 0x16b   : > { %1260 = vpow2.f32 %v654_v43  ;;  %v1251_v61 = vpop.eup %1250  ;;  %v1764_v57 = vadd.f32 %v1687_v6, %v603_v42  ;;  %vm778_vm6 = vcmp.gt.f32.partialorder %v1718_v33, 20.0  ;;  %vm779_vm7 = vcmp.gt.f32.partialorder %v1721_v34, 20.0 }
 0x16c   : > { %1262 = vpow2.f32 %v656_v44  ;;  %v676_v1 = vadd.f32 2.0, %v1251_v61  ;;  %vm780_vm8 = vcmp.gt.f32.partialorder %v1731_v51, 20.0  ;;  %vm781_vm9 = vcmp.gt.f32.partialorder %v1734_v52, 20.0 }
 0x16d   : > { %1264 = vpow2.f32 %v658_v45  ;;  %v1253_v0 = vpop.eup %1252  ;;  %v666_v45 = vmul.f32 1.442695, %v639_v24  ;;  %vm782_vm10 = vcmp.gt.f32.partialorder %v1737_v53, 20.0  ;;  %vm783_vm11 = vcmp.gt.f32.partialorder %v1746_v2, 20.0 }
 0x16e   : > { %v1255_v5 = vpop.eup %1254  ;;  %v677_v7 = vadd.f32 2.0, %v1253_v0  ;;  %1266 = vpow2.f32 %v660_v62  ;;  %v692_v10 = vmul.f32 %v1251_v61, %v676_v1  ;;  %vm784_vm12 = vcmp.gt.f32.partialorder %v1749_v8, 20.0 }
 0x16f   : > { %v1257_v9 = vpop.eup %1256  ;;  %v678_v11 = vadd.f32 2.0, %v1255_v5  ;;  %1268 = vpow2.f32 %v662_v63  ;;  %vm785_vm13 = vcmp.gt.f32.partialorder %v1752_v12, 20.0  ;;  %vm786_vm14 = vcmp.gt.f32.partialorder %v1764_v57, 20.0 }
 0x170   : > { %v693_v16 = vmul.f32 %v1253_v0, %v677_v7  ;;  %v679_v17 = vadd.f32 2.0, %v1257_v9  ;;  %1270 = vpow2.f32 %v664_v4  ;;  %v724_v21 = vadd.f32 2.0, %v692_v10 }
 0x171   : > { %v694_v22 = vmul.f32 %v1255_v5, %v678_v11  ;;  %v708_v59 = vmul.f32 %v692_v10, %v1692_v14  ;;  %v1771_v5 = vadd.f32 %v1687_v6, %v604_v50  ;;  %v642_v10 = vmin.f32 %v1764_v57, 20.0 }
 0x172   : > { %v725_v27 = vadd.f32 2.0, %v693_v16  ;;  %v695_v28 = vmul.f32 %v1257_v9, %v679_v17  ;;  %1272 = vrcp.f32 %v724_v21  ;;  %v709_v3 = vmul.f32 %v693_v16, %v1695_v15 }
 0x173   : > { %v1259_v13 = vpop.eup %1258  ;;  %v726_v36 = vadd.f32 2.0, %v694_v22  ;;  %v710_v7 = vmul.f32 %v694_v22, %v1700_v19  ;;  %v643_v6 = vmin.f32 %v1771_v5, 20.0  ;;  %vm787_vm15 = vcmp.gt.f32.partialorder %v1771_v5, 20.0 }
 0x174   : > { %v680_v23 = vadd.f32 2.0, %v1259_v13  ;;  %1274 = vrcp.f32 %v725_v27  ;;  %v727_v39 = vadd.f32 2.0, %v695_v28 }
 0x175   : > { %v1261_v18 = vpop.eup %1260  ;;  %1276 = vrcp.f32 %v726_v36 }
 0x176   : > { %v1263_v26 = vpop.eup %1262  ;;  %v681_v31 = vadd.f32 2.0, %v1261_v18  ;;  %v696_v37 = vmul.f32 %v1259_v13, %v680_v23  ;;  %1278 = vrcp.f32 %v727_v39  ;;  %v711_v13 = vmul.f32 %v695_v28, %v1703_v20 }
 0x177   : > { %v1265_v35 = vpop.eup %1264  ;;  %v682_v44 = vadd.f32 2.0, %v1263_v26 }
 0x178   : > { %v697_v40 = vmul.f32 %v1261_v18, %v681_v31  ;;  %v728_v43 = vadd.f32 2.0, %v696_v37  ;;  %v683_v47 = vadd.f32 2.0, %v1265_v35  ;;  %v1267_v54 = vpop.eup %1266  ;;  %v712_v23 = vmul.f32 %v696_v37, %v1712_v29 }
 0x179   : > { %v698_v49 = vmul.f32 %v1263_v26, %v682_v44  ;;  %v1269_v58 = vpop.eup %1268  ;;  %v684_v61 = vadd.f32 2.0, %v1267_v54 }
 0x17a   : > { %v729_v46 = vadd.f32 2.0, %v697_v40  ;;  %1280 = vrcp.f32 %v728_v43  ;;  %v699_v55 = vmul.f32 %v1265_v35, %v683_v47  ;;  %v1271_v62 = vpop.eup %1270  ;;  %v685_v0 = vadd.f32 2.0, %v1269_v58 }
 0x17b   : > { %v730_v60 = vadd.f32 2.0, %v698_v49  ;;  %v700_v1 = vmul.f32 %v1267_v54, %v684_v61  ;;  %v686_v4 = vadd.f32 2.0, %v1271_v62  ;;  %v713_v26 = vmul.f32 %v697_v40, %v1715_v30 }
 0x17c   : > { %1282 = vrcp.f32 %v729_v46  ;;  %v731_v63 = vadd.f32 2.0, %v699_v55  ;;  %v701_v9 = vmul.f32 %v1269_v58, %v685_v0  ;;  %v1273_v11 = vpop.eup %1272  ;;  %v672_v35 = vmul.f32 1.442695, %v642_v10 }
 0x17d   : > { %1284 = vpow2.f32 %v666_v45  ;;  %v732_v16 = vadd.f32 2.0, %v700_v1  ;;  %v1776_v17 = vmul.f32 %v1271_v62, %v686_v4  ;;  %v756_v21 = vmul.f32 %v1273_v11, %v708_v59 }
 0x17e   : > { %1286 = vpow2.f32 %v668_v48  ;;  %v1275_v18 = vpop.eup %1274  ;;  %v733_v24 = vadd.f32 2.0, %v701_v9  ;;  %v714_v39 = vmul.f32 %v698_v49, %v1718_v33  ;;  %v674_v40 = vmul.f32 1.442695, %v643_v6 }
 0x17f   : > { %1288 = vrcp.f32 %v730_v60  ;;  %v1277_v25 = vpop.eup %1276  ;;  %v757_v22 = vmul.f32 %v1275_v18, %v709_v3  ;;  %v734_v27 = vadd.f32 2.0, %v1776_v17  ;;  %v788_v28 = vsel %vm772_vm0, %v1692_v14, %v756_v21 }
 0x180   : > { %1290 = vrcp.f32 %v731_v63  ;;  %v1279_v31 = vpop.eup %1278  ;;  %v758_v32 = vmul.f32 %v1277_v25, %v710_v7  ;;  %v716_v59 = vmul.f32 %v700_v1, %v1731_v51  ;;  %v717_v62 = vmul.f32 %v701_v9, %v1734_v52 }
 0x181   : > { %1292 = vpow2.f32 %v670_v56  ;;  %v789_v37 = vsel %vm773_vm1, %v1695_v15, %v757_v22  ;;  %v759_v38 = vmul.f32 %v1279_v31, %v711_v13  ;;  %v715_v15 = vmul.f32 %v699_v55, %v1721_v34 }
 0x182   : > { %1294 = vrcp.f32 %v732_v16  ;;  %v1053_v42 = vpack.c.bf16 %v789_v37, %v788_v28  ;;  %v790_v43 = vsel %vm774_vm2, %v1700_v19, %v758_v32 }
 0x183   : > { %1296 = vrcp.f32 %v733_v24  ;;  %v791_v45 = vsel %vm775_vm3, %v1703_v20, %v759_v38  ;;  %v718_v24 = vmul.f32 %v1776_v17, %v1737_v53 }
 0x184   : > { %v1281_v36 = vpop.eup %1280  ;;  %1298 = vpow2.f32 %v672_v35  ;;  %1054 = vst [vmem:[#allocation8] sm:$0xff] %v1053_v42   ;;  %v1058_v48 = vpack.c.bf16 %v791_v45, %v790_v43 }
 0x185   : > { %v760_v44 = vmul.f32 %v1281_v36, %v712_v23  ;;  %1300 = vpow2.f32 %v674_v40 }
 0x186   : > { %v1283_v41 = vpop.eup %1282  ;;  %1302 = vrcp.f32 %v734_v27  ;;  %1090 = vst [vmem:[#allocation8 + $0x8] sm:$0xff] %v1058_v48  }
 0x187   : > { %v1285_v14 = vpop.eup %1284  ;;  %v761_v46 = vmul.f32 %v1283_v41, %v713_v26  ;;  %v792_v49 = vsel %vm776_vm4, %v1712_v29, %v760_v44 }
 0x188   : > { %v1287_v47 = vpop.eup %1286  ;;  %v687_v50 = vadd.f32 2.0, %v1285_v14 }
 0x189   : > { %v1289_v19 = vpop.eup %1288  ;;  %v793_v54 = vsel %vm777_vm5, %v1715_v30, %v761_v46  ;;  %v688_v20 = vadd.f32 2.0, %v1287_v47 }
 0x18a   : > { %v1291_v55 = vpop.eup %1290  ;;  %v1063_v56 = vpack.c.bf16 %v793_v54, %v792_v49  ;;  %v762_v58 = vmul.f32 %v1289_v19, %v714_v39  ;;  %v703_v60 = vmul.f32 %v1285_v14, %v687_v50 }
 0x18b   : > { %v1293_v29 = vpop.eup %1292  ;;  %v763_v61 = vmul.f32 %v1291_v55, %v715_v15  ;;  %v704_v3 = vmul.f32 %v1287_v47, %v688_v20 }
 0x18c   : > { %1091 = vst [vmem:[#allocation8 + $0x10] sm:$0xff] %v1063_v56   ;;  %v794_v30 = vsel %vm778_vm6, %v1718_v33, %v762_v58  ;;  %v735_v63 = vadd.f32 2.0, %v703_v60  ;;  %v689_v0 = vadd.f32 2.0, %v1293_v29  ;;  %v1295_v4 = vpop.eup %1294  ;;  %v719_v28 = vmul.f32 %v703_v60, %v1746_v2 }
 0x18d   : > { %v795_v7 = vsel %vm779_vm7, %v1721_v34, %v763_v61  ;;  %v736_v1 = vadd.f32 2.0, %v704_v3  ;;  %v1297_v10 = vpop.eup %1296  ;;  %v764_v13 = vmul.f32 %v1295_v4, %v716_v59 }
 0x18e   : > { %v1068_v11 = vpack.c.bf16 %v795_v7, %v794_v30  ;;  %1304 = vrcp.f32 %v735_v63  ;;  %v705_v9 = vmul.f32 %v1293_v29, %v689_v0  ;;  %v765_v16 = vmul.f32 %v1297_v10, %v717_v62  ;;  %v1299_v33 = vpop.eup %1298 }
 0x18f   : > { %1306 = vrcp.f32 %v736_v1  ;;  %v796_v18 = vsel %vm780_vm8, %v1731_v51, %v764_v13  ;;  %v1301_v23 = vpop.eup %1300  ;;  %v690_v6 = vadd.f32 2.0, %v1299_v33  ;;  %v720_v51 = vmul.f32 %v704_v3, %v1749_v8 }
 0x190   : > { %1092 = vst [vmem:[#allocation8 + $0x18] sm:$0xff] %v1068_v11   ;;  %v737_v21 = vadd.f32 2.0, %v705_v9  ;;  %v797_v34 = vsel %vm781_vm9, %v1734_v52, %v765_v16  ;;  %v1303_v25 = vpop.eup %1302  ;;  %v691_v26 = vadd.f32 2.0, %v1301_v23  ;;  %v721_v39 = vmul.f32 %v705_v9, %v1752_v12 }
 0x191   : > { %v1073_v22 = vpack.c.bf16 %v797_v34, %v796_v18  ;;  %v706_v27 = vmul.f32 %v1299_v33, %v690_v6  ;;  %v766_v32 = vmul.f32 %v1303_v25, %v718_v24 }
 0x192   : > { %1308 = vrcp.f32 %v737_v21  ;;  %v707_v31 = vmul.f32 %v1301_v23, %v691_v26 }
 0x193   : > { %1093 = vst [vmem:[#allocation8 + $0x20] sm:$0xff] %v1073_v22   ;;  %v738_v35 = vadd.f32 2.0, %v706_v27  ;;  %v798_v38 = vsel %vm782_vm10, %v1737_v53, %v766_v32  ;;  %v722_v45 = vmul.f32 %v706_v27, %v1764_v57 }
 0x194   : > { %v739_v52 = vadd.f32 2.0, %v707_v31  ;;  %v723_v53 = vmul.f32 %v707_v31, %v1771_v5 }
 0x195   : > { %1310 = vrcp.f32 %v738_v35 }
 0x196   : > { %1312 = vrcp.f32 %v739_v52 }
 0x198   : > { %v1305_v36 = vpop.eup %1304 }
 0x199   : > { %v1307_v17 = vpop.eup %1306  ;;  %v767_v37 = vmul.f32 %v1305_v36, %v719_v28 }
 0x19a   : > { %v768_v40 = vmul.f32 %v1307_v17, %v720_v51 }
 0x19b   : > { %v799_v41 = vsel %vm783_vm11, %v1746_v2, %v767_v37 }
 0x19c   : > { %v1309_v42 = vpop.eup %1308  ;;  %v1078_v43 = vpack.c.bf16 %v799_v41, %v798_v38  ;;  %v800_v14 = vsel %vm784_vm12, %v1749_v8, %v768_v40 }
 0x19d   : > { %v769_v44 = vmul.f32 %v1309_v42, %v721_v39 }
 0x19e   : > { %1094 = vst [vmem:[#allocation8 + $0x28] sm:$0xff] %v1078_v43  }
 0x19f   : > { %v801_v46 = vsel %vm785_vm13, %v1752_v12, %v769_v44  ;;  %v1311_v47 = vpop.eup %1310 }
 0x1a0   : > { %v1083_v15 = vpack.c.bf16 %v801_v46, %v800_v14  ;;  %v1313_v48 = vpop.eup %1312  ;;  %v770_v2 = vmul.f32 %v1311_v47, %v722_v45 }
 0x1a1   : > { %v771_v49 = vmul.f32 %v1313_v48, %v723_v53 }
 0x1a2   : > { %1095 = vst [vmem:[#allocation8 + $0x30] sm:$0xff] %v1083_v15   ;;  %v802_v50 = vsel %vm786_vm14, %v1764_v57, %v770_v2 }
 0x1a3   : > { %v803_v8 = vsel %vm787_vm15, %v1771_v5, %v771_v49 }
 0x1a4   : > { %v1088_v19 = vpack.c.bf16 %v803_v8, %v802_v50 }
 0x1a6   : > { %1096 = vst [vmem:[#allocation8 + $0x38] sm:$0xff] %v1088_v19  }
 0x1a7 PF: > { %p1835_p4 = scmp.eq.s32.totalorder %s982_s21, 8  ;;  %s1466_s25 = smov [#allocation8]  }
 0x1a8   : > { %s893_s5 = sshll.u32 %s1466_s25, 4  ;;  %s894_s5 = int_to_ptr.vmem [resolvable:$true] %s893_s5 }
 0x1a9   : > { %s1374_s7 = scalar_lea.vmem %s894_s5, 1024  ;;  %p1381_p10 = scmp.lt.s32.totalorder %s894_s5, %s894_s5 }
 0x1aa   : > { %p1375_p8 = scmp.ne.s32.totalorder %s894_s5, %s1374_s7  ;;  %p1382_p0 = scmp.lt.s32.totalorder %s1374_s7, %s1374_s7 }
 0x1ac   : > { %p1376_p2 = pnand %p1375_p8, %p1835_p4  ;;  %p1383_p5 = por %p1382_p0, %p1381_p10 }
 0x1ae   : > { %p1377_p3 = pneg %p1376_p2 }
 0x1b0   : > { %p1384_p6 = pnand %p1383_p5, %p1377_p3 }
 0x1b2   : > { %1387 = shalt.err (!%p1384_p6)
}
 0x1b3   : > { %s1388_s21 = scalar_lea.hbm %s1883_s4, 1024 }
 0x1b4   : > { %p1389_p11 = scmp.ne.s32.totalorder %s1883_s4, %s1388_s21  ;;  %p1394_p7 = scmp.lt.u32.totalorder %s1388_s21, %s1883_s4 }
 0x1b6   : > { %p1390_p13 = pnand %p1389_p11, %p1835_p4 }
 0x1b8   : > { %p1391_p1 = pneg %p1390_p13 }
 0x1ba   : > { %p1396_p9 = pnand %p1394_p7, %p1391_p1 }
 0x1bc   : > { %1399 = shalt.err (!%p1396_p9)
}
 0x1bd   : > { %s1467_s6 = smov 64   ;;  %s1468_s8 = smov 4  }
 0x1be   : > { %1166 = dma.vmem_to_hbm [thread:$0]  (%p1835_p4), %s894_s5, 1024, %s1883_s4, [#allocation5], %s1467_s6, %s1467_s6, %s1468_s8  }
 0x1bf   : > { %1433 = dma.done.wait (%p1835_p4), [#allocation5], 1024  }
 0x1c0   : > { %1435 = vsyncadd (%p1835_p4), [#allocation5], 4294966272 }
 0x1c1 PF: > { %s21_s20 = sadd.s32 1, %s1458_s20   ;;  %s1892_s15 = smov %s1442_s16 }
 0x1c2   : > { %p18_p12 = scmp.ge.s32.totalorder %s21_s20, 11   ;;  %s1893_s16 = smov %s1446_s17 }
 0x1c3   : > { %s1894_s17 = smov %s1545_s27  ;;  %s1895_s18 = smov %s1454_s19 }
 0x1c4   : > { %s1896_s19 = smov %s1898_s22  ;;  %20 = sbr.rel (!%p18_p12) target bundleno = 7 (0x7), region = 95 }
 0x1cb   :  { %909 = vsyncpa [#allocation4], 1 }
 0x1cc   :  { %911 = vsyncpa [#allocation4 + $0x1], 1 }
 0x1cd   :  { %912 = vsyncpa [#allocation7], 1 }
 0x1ce   :  { %914 = vsyncpa [#allocation7 + $0x1], 1 }
 0x1cf   :  { %915 = vsyncpa [#allocation5], 1 }
 0x1d0   :  { %917 = vsyncpa [#allocation5 + $0x1], 1 }

</bundles_post_ra>
